<compile_context>
chip_gen: v7x
topology: tpu7x:2x2x1
jax: 0.10.0
libtpu: 0.0.40
codegen_flags: <defaults>
</compile_context>

<pallas_src>
import functools

import jax
import jax.numpy as jnp
from jax.experimental import pallas as pl
from jax.experimental.pallas import tpu as pltpu

INPUT_DIM = 28
HIDDEN_DIM = 100
OUTPUT_DIM = 10

HID_PAD = 128   # 100 -> 128 (lane-dense hidden activations)
OUT_PAD = 128   # 10  -> 128 (lane-dense, unmasked output stores)


def _round_up(x, m):
    return (x + m - 1) // m * m


def ann_kernel(x_ref, w1_ref, b1_ref, w2_ref, b2_ref,
               w3_ref, b3_ref, w4_ref, b4_ref, o_ref):
    # fc1 + ReLU: raw f32 x tile cast to bf16 in-kernel; f32 accumulation.
    x = x_ref[...].astype(jnp.bfloat16)
    h = jnp.dot(x, w1_ref[...], preferred_element_type=jnp.float32) + b1_ref[...]
    h = jnp.maximum(h, 0.0)
    # fc2 + Tanh
    h = jnp.dot(h.astype(jnp.bfloat16), w2_ref[...],
                preferred_element_type=jnp.float32) + b2_ref[...]
    h = jnp.tanh(h)
    # fc3 + ELU (alpha = 1.0, PyTorch default); exp argument clamped to <= 0.
    h = jnp.dot(h.astype(jnp.bfloat16), w3_ref[...],
                preferred_element_type=jnp.float32) + b3_ref[...]
    h = jnp.where(h > 0.0, h, jnp.exp(jnp.minimum(h, 0.0)) - 1.0)
    # fc4
    out = jnp.dot(h.astype(jnp.bfloat16), w4_ref[...],
                  preferred_element_type=jnp.float32) + b4_ref[...]
    o_ref[...] = out.astype(o_ref.dtype)   # bf16, lane-dense (128-wide) store


def pad_params(params):
    """Zero-pad to aligned shapes. Weights -> bf16 [in,out]; biases -> f32 (1,out).

    Padded rows/cols are exactly zero, and ReLU/Tanh/ELU(0) == 0, so the padded
    network computes the same function on the real columns.
    """
    (w1, b1, w2, b2, w3, b3, w4, b4) = params

    def pad_w(w, rp, cp):
        r, c = w.shape
        return jnp.pad(w, ((0, rp - r), (0, cp - c))).astype(jnp.bfloat16)

    def pad_b(b, cp):
        b = b.reshape(1, -1)
        return jnp.pad(b, ((0, 0), (0, cp - b.shape[1]))).astype(jnp.float32)

    return (pad_w(w1, INPUT_DIM, HID_PAD), pad_b(b1, HID_PAD),   # w1 keeps 28 rows
            pad_w(w2, HID_PAD, HID_PAD), pad_b(b2, HID_PAD),
            pad_w(w3, HID_PAD, HID_PAD), pad_b(b3, HID_PAD),
            pad_w(w4, HID_PAD, OUT_PAD), pad_b(b4, OUT_PAD))


def _choose_batch_tile(B, batch_tile):
    # Multiple of 16 (bf16 sublane packing); ensure >= 2 grid steps whenever the
    # batch permits so the "parallel" batch axis can shard across v7x's 2 TCs.
    half = _round_up(-(-B // 2), 16)
    return max(16, min(_round_up(batch_tile, 16), half))


@functools.partial(jax.jit, static_argnames=("batch_tile",))
def ann_forward(x, padded_params, *, batch_tile=2048):
    """x: [B, 28] f32. Returns [B, 10] f32."""
    (w1, b1, w2, b2, w3, b3, w4, b4) = padded_params
    B, D = x.shape
    assert D == INPUT_DIM

    tb = _choose_batch_tile(B, batch_tile)
    Bp = _round_up(B, tb)
    if Bp != B:
        # Row-only pad (f32, no dtype cast); skipped entirely when B % tb == 0.
        x = jnp.pad(x, ((0, Bp - B), (0, 0)))

    def rep(shape):
        # Parameters: same full block every grid step (stay resident in VMEM).
        return pl.BlockSpec(shape, lambda i: (0,) * len(shape))

    out = pl.pallas_call(
        ann_kernel,
        out_shape=jax.ShapeDtypeStruct((Bp, OUT_PAD), jnp.bfloat16),
        grid_spec=pltpu.PrefetchScalarGridSpec(
            num_scalar_prefetch=0,
            grid=(Bp // tb,),
            in_specs=[
                # (tb, 28): 28 equals the full last dim, so the block is legal.
                pl.BlockSpec((tb, INPUT_DIM), lambda i: (i, 0)),
                rep(w1.shape), rep(b1.shape),
                rep(w2.shape), rep(b2.shape),
                rep(w3.shape), rep(b3.shape),
                rep(w4.shape), rep(b4.shape),
            ],
            out_specs=pl.BlockSpec((tb, OUT_PAD), lambda i: (i, 0)),
        ),
        compiler_params=pltpu.CompilerParams(
            dimension_semantics=("parallel",),
            vmem_limit_bytes=32 * 1024 * 1024,
        ),
    )(x, w1, b1, w2, b2, w3, b3, w4, b4)

    # Slice + f32 cast happen inside this jit so XLA fuses them (no standalone
    # full pass over the padded (Bp, 128) block).
    return out[:B, :OUTPUT_DIM].astype(jnp.float32)


def init_params(key):
    ks = jax.random.split(key, 8)

    def linear(kw, kb, fan_in, fan_out):
        # nn.Linear-style uniform init bounds.
        bound = 1.0 / jnp.sqrt(jnp.float32(fan_in))
        w = jax.random.uniform(kw, (fan_in, fan_out), jnp.float32,
                               minval=-bound, maxval=bound)
        b = jax.random.uniform(kb, (fan_out,), jnp.float32,
                               minval=-bound, maxval=bound)
        return w, b

    w1, b1 = linear(ks[0], ks[1], INPUT_DIM, HIDDEN_DIM)
    w2, b2 = linear(ks[2], ks[3], HIDDEN_DIM, HIDDEN_DIM)
    w3, b3 = linear(ks[4], ks[5], HIDDEN_DIM, HIDDEN_DIM)
    w4, b4 = linear(ks[6], ks[7], HIDDEN_DIM, OUTPUT_DIM)
    return (w1, b1, w2, b2, w3, b3, w4, b4)


def reference_forward(x, params):
    (w1, b1, w2, b2, w3, b3, w4, b4) = params
    h = jnp.maximum(x @ w1 + b1, 0.0)
    h = jnp.tanh(h @ w2 + b2)
    h = h @ w3 + b3
    h = jnp.where(h > 0, h, jnp.exp(h) - 1.0)
    return h @ w4 + b4


if __name__ == "__main__":
    key = jax.random.PRNGKey(0)
    k_params, k_x = jax.random.split(key)
    params = init_params(k_params)
    padded = pad_params(params)

    batch = 64
    x = jax.random.normal(k_x, (batch, INPUT_DIM), jnp.float32)

    # Tile chooser caps tb at ceil(B/2) -> tb=32 here, a 2-step grid, so the
    # smoke test exercises the pipelined / megacore path.
    out = ann_forward(x, padded, batch_tile=2048)
    out = jax.block_until_ready(out)

    ref = reference_forward(x, params)
    assert out.shape == (batch, OUTPUT_DIM)
    # bf16 matmul operands + bf16 output store (f32 accumulation) -> bf16-level tolerance.
    assert jnp.allclose(out, ref, atol=5e-2, rtol=5e-2), (
        float(jnp.max(jnp.abs(out - ref))))

    print("KERNEL_OK")
</pallas_src>

<mosaic_0001>
module attributes {stable_mosaic.version = 11 : i64} {
  func.func @ann_kernel(%arg0: i32, %arg1: memref<32x28xf32, #tpu.memory_space<vmem>>, %arg2: memref<28x128xbf16, #tpu.memory_space<vmem>>, %arg3: memref<1x128xf32, #tpu.memory_space<vmem>>, %arg4: memref<128x128xbf16, #tpu.memory_space<vmem>>, %arg5: memref<1x128xf32, #tpu.memory_space<vmem>>, %arg6: memref<128x128xbf16, #tpu.memory_space<vmem>>, %arg7: memref<1x128xf32, #tpu.memory_space<vmem>>, %arg8: memref<128x128xbf16, #tpu.memory_space<vmem>>, %arg9: memref<1x128xf32, #tpu.memory_space<vmem>>, %arg10: memref<32x128xbf16, #tpu.memory_space<vmem>>) attributes {dimension_semantics = [#tpu.dimension_semantics<parallel>], iteration_bounds = array<i64: 2>, scalar_prefetch = 0 : i64, scratch_operands = 0 : i64, tpu.core_type = #tpu.core_type<tc>, window_params = [{transform_indices = @transform_0, window_bounds = array<i64: 32, 28>}, {pipeline_mode = #tpu.pipeline_mode<synchronous>, transform_indices = @transform_1, window_bounds = array<i64: 28, 128>}, {pipeline_mode = #tpu.pipeline_mode<synchronous>, transform_indices = @transform_2, window_bounds = array<i64: 1, 128>}, {pipeline_mode = #tpu.pipeline_mode<synchronous>, transform_indices = @transform_3, window_bounds = array<i64: 128, 128>}, {pipeline_mode = #tpu.pipeline_mode<synchronous>, transform_indices = @transform_4, window_bounds = array<i64: 1, 128>}, {pipeline_mode = #tpu.pipeline_mode<synchronous>, transform_indices = @transform_5, window_bounds = array<i64: 128, 128>}, {pipeline_mode = #tpu.pipeline_mode<synchronous>, transform_indices = @transform_6, window_bounds = array<i64: 1, 128>}, {pipeline_mode = #tpu.pipeline_mode<synchronous>, transform_indices = @transform_7, window_bounds = array<i64: 128, 128>}, {pipeline_mode = #tpu.pipeline_mode<synchronous>, transform_indices = @transform_8, window_bounds = array<i64: 1, 128>}, {transform_indices = @transform_9, window_bounds = array<i64: 32, 128>}]} {
    %c0 = arith.constant 0 : index
    %c0_0 = arith.constant 0 : index
    %0 = vector.load %arg1[%c0, %c0_0] : memref<32x28xf32, #tpu.memory_space<vmem>>, vector<32x28xf32>
    %1 = arith.truncf %0 : vector<32x28xf32> to vector<32x28xbf16>
    %c0_1 = arith.constant 0 : index
    %c0_2 = arith.constant 0 : index
    %2 = vector.load %arg2[%c0_1, %c0_2] : memref<28x128xbf16, #tpu.memory_space<vmem>>, vector<28x128xbf16>
    %cst = arith.constant dense<0.000000e+00> : vector<32x128xf32>
    %3 = tpu.matmul %1, %2, %cst {dimension_numbers = #tpu.dot_dimension_numbers<[1], [0], [0], [1], [0, 0, 1, 1], [], []>} : vector<32x28xbf16>, vector<28x128xbf16>, vector<32x128xf32> -> vector<32x128xf32>
    %c0_3 = arith.constant 0 : index
    %c0_4 = arith.constant 0 : index
    %4 = vector.load %arg3[%c0_3, %c0_4] : memref<1x128xf32, #tpu.memory_space<vmem>>, vector<1x128xf32>
    %5 = vector.broadcast %4 : vector<1x128xf32> to vector<32x128xf32>
    %6 = arith.addf %3, %5 : vector<32x128xf32>
    %cst_5 = arith.constant 0.000000e+00 : f32
    %7 = vector.broadcast %cst_5 : f32 to vector<32x128xf32>
    %8 = arith.maximumf %6, %7 : vector<32x128xf32>
    %9 = arith.truncf %8 : vector<32x128xf32> to vector<32x128xbf16>
    %c0_6 = arith.constant 0 : index
    %c0_7 = arith.constant 0 : index
    %10 = vector.load %arg4[%c0_6, %c0_7] : memref<128x128xbf16, #tpu.memory_space<vmem>>, vector<128x128xbf16>
    %cst_8 = arith.constant dense<0.000000e+00> : vector<32x128xf32>
    %11 = tpu.matmul %9, %10, %cst_8 {dimension_numbers = #tpu.dot_dimension_numbers<[1], [0], [0], [1], [0, 0, 1, 1], [], []>} : vector<32x128xbf16>, vector<128x128xbf16>, vector<32x128xf32> -> vector<32x128xf32>
    %c0_9 = arith.constant 0 : index
    %c0_10 = arith.constant 0 : index
    %12 = vector.load %arg5[%c0_9, %c0_10] : memref<1x128xf32, #tpu.memory_space<vmem>>, vector<1x128xf32>
    %13 = vector.broadcast %12 : vector<1x128xf32> to vector<32x128xf32>
    %14 = arith.addf %11, %13 : vector<32x128xf32>
    %15 = math.tanh %14 : vector<32x128xf32>
    %16 = arith.truncf %15 : vector<32x128xf32> to vector<32x128xbf16>
    %c0_11 = arith.constant 0 : index
    %c0_12 = arith.constant 0 : index
    %17 = vector.load %arg6[%c0_11, %c0_12] : memref<128x128xbf16, #tpu.memory_space<vmem>>, vector<128x128xbf16>
    %cst_13 = arith.constant dense<0.000000e+00> : vector<32x128xf32>
    %18 = tpu.matmul %16, %17, %cst_13 {dimension_numbers = #tpu.dot_dimension_numbers<[1], [0], [0], [1], [0, 0, 1, 1], [], []>} : vector<32x128xbf16>, vector<128x128xbf16>, vector<32x128xf32> -> vector<32x128xf32>
    %c0_14 = arith.constant 0 : index
    %c0_15 = arith.constant 0 : index
    %19 = vector.load %arg7[%c0_14, %c0_15] : memref<1x128xf32, #tpu.memory_space<vmem>>, vector<1x128xf32>
    %20 = vector.broadcast %19 : vector<1x128xf32> to vector<32x128xf32>
    %21 = arith.addf %18, %20 : vector<32x128xf32>
    %cst_16 = arith.constant 0.000000e+00 : f32
    %22 = vector.broadcast %cst_16 : f32 to vector<32x128xf32>
    %23 = arith.cmpf ogt, %21, %22 : vector<32x128xf32>
    %cst_17 = arith.constant 0.000000e+00 : f32
    %24 = vector.broadcast %cst_17 : f32 to vector<32x128xf32>
    %25 = arith.minimumf %21, %24 : vector<32x128xf32>
    %26 = math.exp %25 : vector<32x128xf32>
    %cst_18 = arith.constant 1.000000e+00 : f32
    %27 = vector.broadcast %cst_18 : f32 to vector<32x128xf32>
    %28 = arith.subf %26, %27 : vector<32x128xf32>
    %29 = arith.select %23, %21, %28 : vector<32x128xi1>, vector<32x128xf32>
    %30 = arith.truncf %29 : vector<32x128xf32> to vector<32x128xbf16>
    %c0_19 = arith.constant 0 : index
    %c0_20 = arith.constant 0 : index
    %31 = vector.load %arg8[%c0_19, %c0_20] : memref<128x128xbf16, #tpu.memory_space<vmem>>, vector<128x128xbf16>
    %cst_21 = arith.constant dense<0.000000e+00> : vector<32x128xf32>
    %32 = tpu.matmul %30, %31, %cst_21 {dimension_numbers = #tpu.dot_dimension_numbers<[1], [0], [0], [1], [0, 0, 1, 1], [], []>} : vector<32x128xbf16>, vector<128x128xbf16>, vector<32x128xf32> -> vector<32x128xf32>
    %c0_22 = arith.constant 0 : index
    %c0_23 = arith.constant 0 : index
    %33 = vector.load %arg9[%c0_22, %c0_23] : memref<1x128xf32, #tpu.memory_space<vmem>>, vector<1x128xf32>
    %34 = vector.broadcast %33 : vector<1x128xf32> to vector<32x128xf32>
    %35 = arith.addf %32, %34 : vector<32x128xf32>
    %36 = arith.truncf %35 : vector<32x128xf32> to vector<32x128xbf16>
    %c0_24 = arith.constant 0 : index
    %c0_25 = arith.constant 0 : index
    %37 = vector.load %arg10[%c0_24, %c0_25] : memref<32x128xbf16, #tpu.memory_space<vmem>>, vector<32x128xbf16>
    tpu.vector_store %arg10[%c0_24, %c0_25], %36 {strides = array<i32>} : memref<32x128xbf16, #tpu.memory_space<vmem>>, vector<32x128xbf16>,
    return
  }
  func.func @transform_0(%arg0: i32) -> (i32, i32) {
    %c0_i32 = arith.constant 0 : i32
    %c0_i32_0 = arith.constant 0 : i32
    return %arg0, %c0_i32 : i32, i32
  }
  func.func @transform_1(%arg0: i32) -> (i32, i32) {
    %c0_i32 = arith.constant 0 : i32
    %c0_i32_0 = arith.constant 0 : i32
    %c0_i32_1 = arith.constant 0 : i32
    return %c0_i32, %c0_i32_0 : i32, i32
  }
  func.func @transform_2(%arg0: i32) -> (i32, i32) {
    %c0_i32 = arith.constant 0 : i32
    %c0_i32_0 = arith.constant 0 : i32
    %c0_i32_1 = arith.constant 0 : i32
    return %c0_i32, %c0_i32_0 : i32, i32
  }
  func.func @transform_3(%arg0: i32) -> (i32, i32) {
    %c0_i32 = arith.constant 0 : i32
    %c0_i32_0 = arith.constant 0 : i32
    %c0_i32_1 = arith.constant 0 : i32
    return %c0_i32, %c0_i32_0 : i32, i32
  }
  func.func @transform_4(%arg0: i32) -> (i32, i32) {
    %c0_i32 = arith.constant 0 : i32
    %c0_i32_0 = arith.constant 0 : i32
    %c0_i32_1 = arith.constant 0 : i32
    return %c0_i32, %c0_i32_0 : i32, i32
  }
  func.func @transform_5(%arg0: i32) -> (i32, i32) {
    %c0_i32 = arith.constant 0 : i32
    %c0_i32_0 = arith.constant 0 : i32
    %c0_i32_1 = arith.constant 0 : i32
    return %c0_i32, %c0_i32_0 : i32, i32
  }
  func.func @transform_6(%arg0: i32) -> (i32, i32) {
    %c0_i32 = arith.constant 0 : i32
    %c0_i32_0 = arith.constant 0 : i32
    %c0_i32_1 = arith.constant 0 : i32
    return %c0_i32, %c0_i32_0 : i32, i32
  }
  func.func @transform_7(%arg0: i32) -> (i32, i32) {
    %c0_i32 = arith.constant 0 : i32
    %c0_i32_0 = arith.constant 0 : i32
    %c0_i32_1 = arith.constant 0 : i32
    return %c0_i32, %c0_i32_0 : i32, i32
  }
  func.func @transform_8(%arg0: i32) -> (i32, i32) {
    %c0_i32 = arith.constant 0 : i32
    %c0_i32_0 = arith.constant 0 : i32
    %c0_i32_1 = arith.constant 0 : i32
    return %c0_i32, %c0_i32_0 : i32, i32
  }
  func.func @transform_9(%arg0: i32) -> (i32, i32) {
    %c0_i32 = arith.constant 0 : i32
    %c0_i32_0 = arith.constant 0 : i32
    return %arg0, %c0_i32 : i32, i32
  }
}

</mosaic_0001>

<bundles_post_ra>
// kernel: ann_forward.1
= control target key start
LH: loop header
LB: loop body
LE: loop exit
PB: predicated region body
PF: predicated region fallthrough
CT: control target
= control target key end

     0   :  { %14 = vsyncpa [#allocation3], 0  ;;  %s1467_s0 = inlined_call_operand.vmem [shape: f32[64,28], index: 0, kind: input, shape index: {}]   ;;  %s1468_s1 = inlined_call_operand.vmem [shape: bf16[28,128], index: 1, kind: input, shape index: {}]   ;;  %s1469_s2 = inlined_call_operand.vmem [shape: f32[1,128], index: 2, kind: input, shape index: {}]   ;;  %s1470_s3 = inlined_call_operand.vmem [shape: bf16[128,128], index: 3, kind: input, shape index: {}]   ;;  %s1471_s4 = inlined_call_operand.vmem [shape: f32[1,128], index: 4, kind: input, shape index: {}]   ;;  %s1472_s5 = inlined_call_operand.hbm [shape: bf16[128,128], index: 5, kind: input, shape index: {}]   ;;  %s1473_s6 = inlined_call_operand.vmem [shape: f32[1,128], index: 6, kind: input, shape index: {}]   ;;  %s1474_s7 = inlined_call_operand.hbm [shape: bf16[128,128], index: 7, kind: input, shape index: {}]   ;;  %s1475_s8 = inlined_call_operand.vmem [shape: f32[1,128], index: 8, kind: input, shape index: {}]   ;;  %s1476_s9 = inlined_call_operand.vmem [shape: bf16[64,128], index: 9, kind: output, shape index: {}]  }
   0x1   :  { %15 = vsyncpa [#allocation5], 0  ;;  %s1323_s30 = smov 0  }
   0x2 LB: > { %s951_s10 = sadd.s32 4294967295, %s1267_s30   ;;  %p953_p0 = scmp.ge.s32.totalorder %s1267_s30, 1  ;;  %s1267_s30 = sphi %s1323_s30, %s21_s30  }
   0x3   : > { %p246_p1 = scmp.lt.s32.totalorder %s1267_s30, 3  ;;  %s1269_s11 = smov [#allocation2]  }
   0x4   : > { %s270_s12 = sshll.u32 %s1269_s11, 4  ;;  %p1337_p3 = scmp.eq.s32.totalorder %s951_s10, 0  ;;  %s271_s12 = int_to_ptr.vmem [resolvable:$true] %s270_s12 }
   0x5   : > { %p1331_p2 = pnand %p953_p0, %p246_p1  ;;  %s1270_s15 = smov [#allocation4]  }
   0x6   : > { %s1481_s14 = scalar_select %p1337_p3, 1, 0 }
   0x7   : > { %s1480_s13 = scalar_select %p1331_p2, 1, 0 }
   0x8   : > { %p1132_p4 = pneg %p1331_p2  ;;  %s286_s16 = sshll.u32 %s1270_s15, 4  ;;  %s1349_s16 = int_to_ptr.vmem [resolvable:$true] %s286_s16 }
   0x9   : > { %s1197_s20 = scalar_lea.hbm %s1472_s5, 1024 }
   0xa   : > { %p1345_p5 = pnand %p1337_p3, %p1132_p4  ;;  %p1198_p6 = scmp.ne.s32.totalorder %s1472_s5, %s1197_s20 }
   0xb   : > { %p1204_p10 = scmp.lt.u32.totalorder %s1197_s20, %s1472_s5 }
   0xc   : > { %p1199_p7 = pneg %p1345_p5 }
   0xe   : > { %p1200_p8 = pnand %p1199_p7, %p1198_p6 }
  0x10   : > { %p1201_p9 = pneg %p1200_p8 }
  0x12   : > { %p1206_p11 = pnand %p1204_p10, %p1201_p9 }
  0x14   : > { %1209 = shalt.err (!%p1206_p11)
}
  0x15   : > { %s1210_s25 = scalar_lea.vmem %s271_s12, 1024  ;;  %p1218_p1 = scmp.lt.s32.totalorder %s271_s12, %s271_s12 }
  0x16   : > { %p1211_p12 = scmp.ne.s32.totalorder %s271_s12, %s1210_s25  ;;  %p1219_p4 = scmp.lt.s32.totalorder %s1210_s25, %s1210_s25 }
  0x18   : > { %p1213_p13 = pnand %p1211_p12, %p1199_p7  ;;  %p1220_p3 = por %p1219_p4, %p1218_p1 }
  0x1a   : > { %p1214_p0 = pneg %p1213_p13 }
  0x1c   : > { %p1221_p2 = pnand %p1220_p3, %p1214_p0 }
  0x1e   : > { %1224 = shalt.err (!%p1221_p2)
}
  0x1f   : > { %s1271_s26 = smov 64   ;;  %s1272_s27 = smov 4  }
  0x20   : > { %1135 = dma.hbm_to_vmem [thread:$0]  (!%p1345_p5), %s1472_s5, 1024, %s271_s12, [#allocation3], %s1271_s26, %s1271_s26, %s1272_s27  }
  0x21   : > { %s1225_s18 = scalar_lea.hbm %s1474_s7, 1024 }
  0x22   : > { %p1226_p6 = scmp.ne.s32.totalorder %s1474_s7, %s1225_s18  ;;  %p1232_p8 = scmp.lt.u32.totalorder %s1225_s18, %s1474_s7 }
  0x24   : > { %p1228_p2 = pnand %p1226_p6, %p1199_p7 }
  0x26   : > { %p1229_p3 = pneg %p1228_p2 }
  0x28   : > { %p1234_p9 = pnand %p1232_p8, %p1229_p3 }
  0x2a   : > { %1237 = shalt.err (!%p1234_p9)
}
  0x2b   : > { %s1238_s12 = scalar_lea.vmem %s1349_s16, 1024  ;;  %p1246_p13 = scmp.lt.s32.totalorder %s1349_s16, %s1349_s16 }
  0x2c   : > { %p1239_p10 = scmp.ne.s32.totalorder %s1349_s16, %s1238_s12  ;;  %p1247_p0 = scmp.lt.s32.totalorder %s1238_s12, %s1238_s12 }
  0x2e   : > { %p1241_p11 = pnand %p1239_p10, %p1199_p7  ;;  %p1248_p1 = por %p1247_p0, %p1246_p13 }
  0x30   : > { %p1242_p12 = pneg %p1241_p11 }
  0x32   : > { %p1249_p4 = pnand %p1248_p1, %p1242_p12 }
  0x34   : > { %1252 = shalt.err (!%p1249_p4)
}
  0x35   : > { %1138 = dma.hbm_to_vmem [thread:$0]  (!%p1345_p5), %s1474_s7, 1024, %s1349_s16, [#allocation5], %s1271_s26, %s1271_s26, %s1272_s27  }
  0x36   : > { %p1483_p6 = scmp.ne.s32.totalorder %s1480_s13, 0 }
  0x37   : > { %p1484_p2 = scmp.ne.s32.totalorder (!%p1483_p6), %s1481_s14, 0 }
  0x38   : > { %314 = sbr.rel (%p1483_p6) target bundleno = 987 (0x3db), region = 56 }
  0x3f   : > { %1258 = dma.done.wait (%p1484_p2), [#allocation3], 1024  }
  0x40   : > { %1260 = vsyncadd (%p1484_p2), [#allocation3], 4294966272 }
  0x41   : > { %1262 = dma.done.wait (%p1484_p2), [#allocation5], 1024  }
  0x42   : > { %1264 = vsyncadd (%p1484_p2), [#allocation5], 4294966272  ;;  %s960_s17 = sshll.u32 %s951_s10, 2  ;;  %v1155_v0 = vld [vmem:[%s1468_s1] sm:$0xff]   ;;  %vm402_vm0 = vcmask 1045504   ;;  %vm395_vm1 = vcmask 228352  }
  0x43   : > { %p355_p7 = scmp.lt.s32.totalorder %s960_s17, 7  ;;  %v1156_v1 = vld [vmem:[%s1468_s1 + $0x8] sm:$0x3f]   ;;  %1055 = vmatprep.subr.bf16.mxu0 %v1155_v0  ;;  %v1157_v8 = vld [vmem:[%s1470_s3] sm:$0xff]   ;;  %v1159_v11 = vld [vmem:[%s1470_s3 + $0x10] sm:$0xff]  }
  0x44   : > { %1056 = vmatpush3.bf16.msra.mxu0 %v1155_v0  ;;  %v404_v7 = vsel %vm402_vm0, %v1156_v1, 0  ;;  %v1158_v9 = vld [vmem:[%s1470_s3 + $0x8] sm:$0xff]   ;;  %1063 = vmatprep.subr.bf16.mxu1 %v1157_v8  ;;  %v1160_v12 = vld [vmem:[%s1470_s3 + $0x18] sm:$0xff]   ;;  %v1161_v13 = vld [vmem:[%s1470_s3 + $0x20] sm:$0xff]  }
  0x45   : > { %s1486_s17 = smov (!%p355_p7, %s960_s17), 7  ;;  %1123 = vmatprep.subr.msk.bf16.mxu0 %vm402_vm0, %v1156_v1  ;;  %1064 = vmatpush3.bf16.msra.mxu1 %v1157_v8  ;;  %v1162_v14 = vld [vmem:[%s1470_s3 + $0x28] sm:$0xff]   ;;  %v1163_v15 = vld [vmem:[%s1470_s3 + $0x30] sm:$0xff]   ;;  %v1164_v16 = vld [vmem:[%s1470_s3 + $0x38] sm:$0xff]  }
  0x46   : > { %s961_s13 = sshll.u32 %s1486_s17, 3  ;;  %1065 = vmatprep.subr.bf16.mxu1 %v1158_v9  ;;  %v1165_v17 = vld [vmem:[#allocation2] sm:$0xff]   ;;  %v1166_v18 = vld [vmem:[#allocation2 + $0x8] sm:$0xff]   ;;  %v1167_v19 = vld [vmem:[#allocation2 + $0x10] sm:$0xff]   ;;  %s963_s20 = sshll.u32 %s1486_s17, 2 }
  0x47   : > { %s358_s26 = scalar_lea.vmem %s1467_s0, %s961_s13  ;;  %v964_v20 = vld [vmem:[%s1469_s2] ss:$0 sm:$0xff]  ;;  %v1168_v35 = vld [vmem:[#allocation2 + $0x18] sm:$0xff]   ;;  %v1170_v37 = vld [vmem:[#allocation2 + $0x28] sm:$0xff]   ;;  %s364_s12 = scalar_lea.vmem %s1476_s9, %s963_s20 }
  0x48   : > { %v367_v2 = vld [vmem:[%s358_s26] sm:$0xff]  ;;  %v368_v3 = vld [vmem:[%s358_s26 + $0x8] sm:$0xff]  ;;  %v369_v4 = vld [vmem:[%s358_s26 + $0x10] sm:$0xff]  ;;  %1058 = vmatpush3.bf16.msra.mxu0 %v404_v7 }
  0x49   : > { %v371_v5 = vpack.c.bf16 %v368_v3, %v367_v2  ;;  %v370_v6 = vld [vmem:[%s358_s26 + $0x18] sm:$0xff]  ;;  %1066 = vmatpush3.bf16.msra.mxu1 %v1158_v9  ;;  %1083 = vmatprep.subr.bf16.mxu0 %v1165_v17  ;;  %v1169_v36 = vld [vmem:[#allocation2 + $0x20] sm:$0xff]   ;;  %v1171_v38 = vld [vmem:[#allocation2 + $0x30] sm:$0xff]  }
  0x4a   : > { %v372_v10 = vpack.c.bf16 %v370_v6, %v369_v4  ;;  %1067 = vmatprep.subr.bf16.mxu1 %v1159_v11  ;;  %v1172_v39 = vld [vmem:[#allocation2 + $0x38] sm:$0xff]   ;;  %v1173_v40 = vld [vmem:[#allocation4] sm:$0xff]   ;;  %v1174_v41 = vld [vmem:[#allocation4 + $0x8] sm:$0xff]  }
  0x4b   : > { %1059 = vmatprep.mubr.msk.bf16.mxu0 %vm395_vm1, %v371_v5  ;;  %v969_v42 = vld [vmem:[%s1471_s4] ss:$0 sm:$0xff]  ;;  %v1175_v57 = vld [vmem:[#allocation4 + $0x10] sm:$0xff]   ;;  %v1176_v58 = vld [vmem:[#allocation4 + $0x18] sm:$0xff]  }
  0x4c   : > { %1060 = vmatmul.mubr.msk.bf16.vlgmr.msra.gmra.mrb[0].mxu0 %vm395_vm1, %v372_v10  ;;  %v1177_v59 = vld [vmem:[#allocation4 + $0x20] sm:$0xff]   ;;  %v1178_v60 = vld [vmem:[#allocation4 + $0x28] sm:$0xff]   ;;  %v1179_v61 = vld [vmem:[#allocation4 + $0x30] sm:$0xff]  }
  0x4d   : > { %1068 = vmatpush3.bf16.msra.mxu1 %v1159_v11  ;;  %1084 = vmatpush3.bf16.msra.mxu0 %v1165_v17  ;;  %v1180_v62 = vld [vmem:[#allocation4 + $0x38] sm:$0xff]   ;;  %v978_v63 = vld [vmem:[%s1473_s6] ss:$0 sm:$0xff] }
  0x4e   : > { %1069 = vmatprep.subr.bf16.mxu1 %v1160_v12  ;;  %1085 = vmatprep.subr.bf16.mxu0 %v1166_v18 }
  0x51   : > { %1070 = vmatpush3.bf16.msra.mxu1 %v1160_v12  ;;  %1086 = vmatpush3.bf16.msra.mxu0 %v1166_v18 }
  0x52   : > { %1071 = vmatprep.subr.bf16.mxu1 %v1161_v13  ;;  %1087 = vmatprep.subr.bf16.mxu0 %v1167_v19 }
  0x55   : > { %1072 = vmatpush3.bf16.msra.mxu1 %v1161_v13  ;;  %1088 = vmatpush3.bf16.msra.mxu0 %v1167_v19 }
  0x56   : > { %1073 = vmatprep.subr.bf16.mxu1 %v1162_v14  ;;  %1089 = vmatprep.subr.bf16.mxu0 %v1168_v35 }
  0x59   : > { %1074 = vmatpush3.bf16.msra.mxu1 %v1162_v14  ;;  %1090 = vmatpush3.bf16.msra.mxu0 %v1168_v35 }
  0x5a   : > { %1075 = vmatprep.subr.bf16.mxu1 %v1163_v15  ;;  %1091 = vmatprep.subr.bf16.mxu0 %v1169_v36 }
  0x5d   : > { %1076 = vmatpush3.bf16.msra.mxu1 %v1163_v15  ;;  %1092 = vmatpush3.bf16.msra.mxu0 %v1169_v36 }
  0x5e   : > { %1077 = vmatprep.subr.bf16.mxu1 %v1164_v16  ;;  %1093 = vmatprep.subr.bf16.mxu0 %v1170_v37 }
  0x61   : > { %1078 = vmatpush3.bf16.msra.mxu1 %v1164_v16  ;;  %1094 = vmatpush3.bf16.msra.mxu0 %v1170_v37 }
  0x62   : > { %1095 = vmatprep.subr.bf16.mxu0 %v1171_v38  ;;  %1103 = vmatprep.subr.bf16.mxu1 %v1173_v40 }
  0x65   : > { %1096 = vmatpush3.bf16.msra.mxu0 %v1171_v38 }
  0x66   : > { %1097 = vmatprep.subr.bf16.mxu0 %v1172_v39 }
  0x69   : > { %1098 = vmatpush3.bf16.msra.mxu0 %v1172_v39 }
 0x11f   : > { %v1061_v21 = vpop.f32.mrb[0].mxu0 }
 0x120   : > { %v449_v22 = vadd.f32 %v1061_v21, %v964_v20  ;;  %v440_v23 = vpop.f32.mrb[1].mxu0 }
 0x121   : > { %v441_v24 = vadd.f32 %v964_v20, %v440_v23  ;;  %v1062_v25 = vpop.f32.mrb[2].mxu0 }
 0x122   : > { %v452_v26 = vadd.f32 %v1062_v25, %v964_v20  ;;  %v443_v27 = vpop.f32.mrb[3].mxu0  ;;  %v457_v29 = vmax.f32 %v449_v22, 0.0 }
 0x123   : > { %v444_v28 = vadd.f32 %v964_v20, %v443_v27  ;;  %v455_v31 = vmax.f32 %v441_v24, 0.0 }
 0x124   : > { %v458_v30 = vmax.f32 %v452_v26, 0.0 }
 0x125   : > { %v456_v32 = vmax.f32 %v444_v28, 0.0 }
 0x126   : > { %v460_v33 = vpack.c.bf16 %v458_v30, %v457_v29 }
 0x127   : > { %v459_v34 = vpack.c.bf16 %v456_v32, %v455_v31  ;;  %v991_v31 = vld [vmem:[%s1475_s8] ss:$0 sm:$0xff] }
 0x129   : > { %1079 = vmatprep.mubr.bf16.mxu1 %v459_v34 }
 0x12a   : > { %1080 = vmatmul.mubr.bf16.vlgmr.msra.gmra.mrb[0].mxu1 %v460_v33 }
 0x12b   : > { %1104 = vmatpush3.bf16.msra.mxu1 %v1173_v40 }
 0x12c   : > { %1105 = vmatprep.subr.bf16.mxu1 %v1174_v41 }
 0x12f   : > { %1106 = vmatpush3.bf16.msra.mxu1 %v1174_v41 }
 0x130   : > { %1107 = vmatprep.subr.bf16.mxu1 %v1175_v57 }
 0x133   : > { %1108 = vmatpush3.bf16.msra.mxu1 %v1175_v57 }
 0x134   : > { %1109 = vmatprep.subr.bf16.mxu1 %v1176_v58 }
 0x137   : > { %1110 = vmatpush3.bf16.msra.mxu1 %v1176_v58 }
 0x138   : > { %1111 = vmatprep.subr.bf16.mxu1 %v1177_v59 }
 0x13b   : > { %1112 = vmatpush3.bf16.msra.mxu1 %v1177_v59 }
 0x13c   : > { %1113 = vmatprep.subr.bf16.mxu1 %v1178_v60 }
 0x13f   : > { %1114 = vmatpush3.bf16.msra.mxu1 %v1178_v60 }
 0x140   : > { %1115 = vmatprep.subr.bf16.mxu1 %v1179_v61 }
 0x143   : > { %1116 = vmatpush3.bf16.msra.mxu1 %v1179_v61 }
 0x144   : > { %1117 = vmatprep.subr.bf16.mxu1 %v1180_v62 }
 0x147   : > { %1118 = vmatpush3.bf16.msra.mxu1 %v1180_v62 }
 0x1fd   : > { %v1081_v43 = vpop.f32.mrb[0].mxu1 }
 0x1fe   : > { %v575_v44 = vadd.f32 %v1081_v43, %v969_v42  ;;  %v566_v45 = vpop.f32.mrb[1].mxu1 }
 0x1ff   : > { %v567_v46 = vadd.f32 %v969_v42, %v566_v45  ;;  %v1082_v47 = vpop.f32.mrb[2].mxu1 }
 0x200   : > { %1181 = vtanh.f32 %v575_v44  ;;  %v578_v48 = vadd.f32 %v1082_v47, %v969_v42  ;;  %v569_v49 = vpop.f32.mrb[3].mxu1 }
 0x201   : > { %1183 = vtanh.f32 %v567_v46  ;;  %v570_v50 = vadd.f32 %v969_v42, %v569_v49 }
 0x202   : > { %1185 = vtanh.f32 %v578_v48 }
 0x203   : > { %1187 = vtanh.f32 %v570_v50 }
 0x20a   : > { %v1182_v51 = vpop.eup %1181 }
 0x20b   : > { %v1184_v52 = vpop.eup %1183 }
 0x20c   : > { %v1186_v53 = vpop.eup %1185 }
 0x20d   : > { %v1188_v54 = vpop.eup %1187  ;;  %v586_v55 = vpack.c.bf16 %v1186_v53, %v1182_v51 }
 0x20e   : > { %v585_v56 = vpack.c.bf16 %v1188_v54, %v1184_v52 }
 0x210   : > { %1099 = vmatprep.mubr.bf16.mxu0 %v585_v56 }
 0x211   : > { %1100 = vmatmul.mubr.bf16.vlgmr.msra.gmra.mrb[4].mxu0 %v586_v55 }
 0x2e4   : > { %v1101_v0 = vpop.f32.mrb[4].mxu0 }
 0x2e5   : > { %v701_v1 = vadd.f32 %v1101_v0, %v978_v63  ;;  %v692_v2 = vpop.f32.mrb[5].mxu0 }
 0x2e6   : > { %v693_v3 = vadd.f32 %v978_v63, %v692_v2  ;;  %v1102_v4 = vpop.f32.mrb[6].mxu0 }
 0x2e7   : > { %v713_v5 = vmin.f32 %v701_v1, 0.0  ;;  %v704_v6 = vadd.f32 %v1102_v4, %v978_v63  ;;  %v695_v7 = vpop.f32.mrb[7].mxu0  ;;  %vm709_vm2 = vcmp.gt.f32.partialorder %v701_v1, 0.0 }
 0x2e8   : > { %v711_v8 = vmin.f32 %v693_v3, 0.0  ;;  %v696_v9 = vadd.f32 %v978_v63, %v695_v7  ;;  %vm707_vm4 = vcmp.gt.f32.partialorder %v693_v3, 0.0 }
 0x2e9   : > { %v719_v10 = vmul.f32 1.442695, %v713_v5  ;;  %v714_v11 = vmin.f32 %v704_v6, 0.0  ;;  %vm710_vm3 = vcmp.gt.f32.partialorder %v704_v6, 0.0 }
 0x2ea   : > { %v715_v12 = vmul.f32 1.442695, %v711_v8  ;;  %v712_v13 = vmin.f32 %v696_v9, 0.0  ;;  %vm708_vm5 = vcmp.gt.f32.partialorder %v696_v9, 0.0 }
 0x2eb   : > { %1189 = vpow2.f32 %v719_v10  ;;  %v721_v14 = vmul.f32 1.442695, %v714_v11 }
 0x2ec   : > { %1191 = vpow2.f32 %v715_v12  ;;  %v717_v15 = vmul.f32 1.442695, %v712_v13 }
 0x2ed   : > { %1193 = vpow2.f32 %v721_v14 }
 0x2ee   : > { %1195 = vpow2.f32 %v717_v15 }
 0x2f5   : > { %v1190_v16 = vpop.eup %1189 }
 0x2f6   : > { %v1192_v17 = vpop.eup %1191  ;;  %v989_v18 = vadd.f32 -1.0, %v1190_v16 }
 0x2f7   : > { %v1194_v19 = vpop.eup %1193  ;;  %v987_v20 = vadd.f32 -1.0, %v1192_v17 }
 0x2f8   : > { %v1196_v21 = vpop.eup %1195  ;;  %v990_v22 = vadd.f32 -1.0, %v1194_v19  ;;  %v729_v24 = vsel %vm709_vm2, %v701_v1, %v989_v18 }
 0x2f9   : > { %v988_v23 = vadd.f32 -1.0, %v1196_v21  ;;  %v727_v27 = vsel %vm707_vm4, %v693_v3, %v987_v20 }
 0x2fa   : > { %v730_v25 = vsel %vm710_vm3, %v704_v6, %v990_v22 }
 0x2fb   : > { %v732_v26 = vpack.c.bf16 %v730_v25, %v729_v24  ;;  %v728_v28 = vsel %vm708_vm5, %v696_v9, %v988_v23 }
 0x2fc   : > { %v731_v29 = vpack.c.bf16 %v728_v28, %v727_v27 }
 0x2fe   : > { %1119 = vmatprep.mubr.bf16.mxu1 %v731_v29 }
 0x2ff   : > { %1120 = vmatmul.mubr.bf16.vlgmr.msra.gmra.mrb[4].mxu1 %v732_v26 }
 0x3d2   : > { %v1121_v30 = vpop.f32.mrb[4].mxu1 }
 0x3d3   : > { %v838_v32 = vpop.f32.mrb[5].mxu1  ;;  %v847_v34 = vadd.f32 %v1121_v30, %v991_v31 }
 0x3d4   : > { %v1122_v33 = vpop.f32.mrb[6].mxu1  ;;  %v839_v37 = vadd.f32 %v991_v31, %v838_v32 }
 0x3d5   : > { %v850_v35 = vadd.f32 %v1122_v33, %v991_v31  ;;  %v841_v36 = vpop.f32.mrb[7].mxu1 }
 0x3d6   : > { %v842_v38 = vadd.f32 %v991_v31, %v841_v36 }
 0x3d7   : > { %v1018_v39 = vpack.c.bf16 %v850_v35, %v847_v34 }
 0x3d8   : > { %v1013_v40 = vpack.c.bf16 %v842_v38, %v839_v37 }
 0x3d9   : > { %1020 = vst [vmem:[%s364_s12 + $0x8] sm:$0xff] %v1018_v39  }
 0x3da   : > { %1014 = vst [vmem:[%s364_s12] sm:$0xff] %v1013_v40  }
 0x3db PF: > { %s21_s30 = sadd.s32 1, %s1267_s30  }
 0x3dc   : > { %p18_p5 = scmp.ge.s32.totalorder %s21_s30, 4  }
 0x3de   :  { %20 = sbr.rel (!%p18_p5) target bundleno = 2 (0x2), region = 95 }
 0x3e5   :  { %895 = vsyncpa [#allocation3], 1 }
 0x3e6   :  { %897 = vsyncpa [#allocation3 + $0x1], 1 }
 0x3e7   :  { %898 = vsyncpa [#allocation5], 1 }

</bundles_post_ra>
